<compile_context>
chip_gen: v6e
topology: v6e:2x2x1
jax: 0.10.0
libtpu: 0.0.40
codegen_flags: <defaults>
</compile_context>

<pallas_src>
import jax
import jax.numpy as jnp
from jax import lax
from jax.experimental import pallas as pl
from jax.experimental.pallas import tpu as pltpu


def _se_kernel(x_ref, w1_ref, w2_ref, o_ref):
    # x_ref block: (Bt, C, HW) -- native layout: channels on sublanes,
    # spatial on lanes.
    hw = x_ref.shape[2]
    inv_hw = jnp.float32(1.0 / hw)

    # Squeeze: global average pool over spatial (lane reduction).  The f32
    # widening is fused into the reduction -- no full-size f32 temporary.
    y = jnp.sum(x_ref[...], axis=2, dtype=jnp.float32) * inv_hw       # (Bt, C)

    # Excite: fc1 -> relu -> fc2 -> sigmoid (tiny MLP on the MXU, f32 acc).
    # w1_ref: (Cr, C) -- contract y's C with w1's C ("nt" matmul).
    h1 = lax.dot_general(y, w1_ref[...].astype(jnp.float32),
                         (((1,), (1,)), ((), ())),
                         preferred_element_type=jnp.float32)           # (Bt, Cr)
    h1 = jnp.maximum(h1, 0.0)
    # w2_ref: (C, Cr) -- contract h1's Cr with w2's Cr.
    h2 = lax.dot_general(h1, w2_ref[...].astype(jnp.float32),
                         (((1,), (1,)), ((), ())),
                         preferred_element_type=jnp.float32)           # (Bt, C)
    scale = jax.nn.sigmoid(h2)                                          # (Bt, C) f32

    # Reweight: re-read the ref (bounds vreg pressure; vld slots are cheap)
    # and broadcast the gate across the spatial lanes.  For bf16 inputs the
    # gate is quantized to bf16 before the multiply (documented tolerance).
    o_ref[...] = x_ref[...] * scale[:, :, None].astype(o_ref.dtype)


def _usable_vmem_bytes():
    """75% of physical VMEM (leaves compiler-internal scratch headroom).
    Generation-aware: 128 MiB on v5e/v6e, 64 MiB per TC on v7x."""
    try:
        cap = int(pltpu.get_tpu_info().vmem_capacity_bytes)
    except Exception:
        cap = 64 << 20          # conservative fallback (safe on every chip)
    return (cap * 3) // 4


def _pick_batch_tile(B, per_sample_bytes, block_budget_bytes):
    """Largest Bt dividing B whose block fits the budget (>=1)."""
    bt = 1
    for cand in range(1, B + 1):
        if B % cand == 0 and cand * per_sample_bytes <= block_budget_bytes:
            bt = cand
    return bt


def se_block(x, fc1_w, fc2_w):
    """x: (B, C, H, W); fc1_w: (C//r, C); fc2_w: (C, C//r).  PyTorch orientation."""
    B, C, H, W = x.shape
    HW = H * W
    Cr = fc1_w.shape[0]
    dtype_bytes = jnp.dtype(x.dtype).itemsize

    # Free reshape (row-major contiguous) -- no HBM copy, no transpose.
    x_flat = x.reshape(B, C, HW)

    w_bytes = (fc1_w.size * jnp.dtype(fc1_w.dtype).itemsize
               + fc2_w.size * jnp.dtype(fc2_w.dtype).itemsize)

    usable = _usable_vmem_bytes()
    # 2x double-buffered (in + out) blocks + double-buffered weights + headroom.
    block_budget = max(1 << 20, (usable - 2 * w_bytes - (2 << 20)) // 4)

    per_sample = C * HW * dtype_bytes
    Bt = _pick_batch_tile(B, per_sample, block_budget)
    grid = (B // Bt,)

    block_bytes = Bt * per_sample
    vmem_limit = int(min(4 * block_bytes + 2 * w_bytes + (2 << 20), usable))

    cost = pl.CostEstimate(
        flops=2 * B * HW * C + 4 * B * C * Cr,        # pool + reweight + tiny MLP
        transcendentals=B * C,                        # sigmoid
        bytes_accessed=2 * B * HW * C * dtype_bytes + w_bytes,
    )

    out_flat = pl.pallas_call(
        _se_kernel,
        out_shape=jax.ShapeDtypeStruct((B, C, HW), x.dtype),
        grid_spec=pltpu.PrefetchScalarGridSpec(
            num_scalar_prefetch=0,
            grid=grid,
            in_specs=[
                pl.BlockSpec((Bt, C, HW), lambda b: (b, 0, 0)),
                pl.BlockSpec((Cr, C), lambda b: (0, 0)),
                pl.BlockSpec((C, Cr), lambda b: (0, 0)),
            ],
            out_specs=pl.BlockSpec((Bt, C, HW), lambda b: (b, 0, 0)),
        ),
        compiler_params=pltpu.CompilerParams(
            dimension_semantics=("parallel",),
            vmem_limit_bytes=vmem_limit),
        cost_estimate=cost,
    )(x_flat, fc1_w, fc2_w)

    return out_flat.reshape(B, C, H, W)


def se_block_ref(x, fc1_w, fc2_w):
    """Pure-JAX reference matching the PyTorch module."""
    y = jnp.mean(x, axis=(2, 3))                  # (B, C)
    y = jnp.maximum(y @ fc1_w.T, 0.0)             # (B, C//r)
    y = jax.nn.sigmoid(y @ fc2_w.T)               # (B, C)
    return x * y[:, :, None, None]


if __name__ == "__main__":
    # Small shapes consistent with the module (channel divisible by reduction=16).
    # HW = 256 is a multiple of 128 -> lane-dense, unmasked stores.
    B, C, H, W = 4, 64, 16, 16
    reduction = 16
    Cr = C // reduction

    key = jax.random.PRNGKey(0)
    kx, k1, k2 = jax.random.split(key, 3)

    x = jax.random.normal(kx, (B, C, H, W), dtype=jnp.float32)
    # Deterministic synthetic weights (nn.Linear-like scale, bias=False).
    fc1_w = jax.random.uniform(k1, (Cr, C), jnp.float32,
                               minval=-1.0, maxval=1.0) * (1.0 / jnp.sqrt(C))
    fc2_w = jax.random.uniform(k2, (C, Cr), jnp.float32,
                               minval=-1.0, maxval=1.0) * (1.0 / jnp.sqrt(Cr))

    out = se_block(x, fc1_w, fc2_w)
    out = jax.block_until_ready(out)

    ref = se_block_ref(x, fc1_w, fc2_w)
    assert out.shape == (B, C, H, W)
    assert jnp.allclose(out, ref, atol=1e-5, rtol=1e-5), "mismatch vs reference"

    print("KERNEL_OK")
</pallas_src>

<mosaic_0001>
module attributes {stable_mosaic.version = 11 : i64} {
  func.func @_se_kernel(%arg0: i32, %arg1: memref<4x64x256xf32, #tpu.memory_space<vmem>>, %arg2: memref<4x64xf32, #tpu.memory_space<vmem>>, %arg3: memref<64x4xf32, #tpu.memory_space<vmem>>, %arg4: memref<4x64x256xf32, #tpu.memory_space<vmem>>) attributes {dimension_semantics = [#tpu.dimension_semantics<parallel>], iteration_bounds = array<i64: 1>, scalar_prefetch = 0 : i64, scratch_operands = 0 : i64, tpu.core_type = #tpu.core_type<tc>, window_params = [{transform_indices = @transform_0, window_bounds = array<i64: 4, 64, 256>}, {pipeline_mode = #tpu.pipeline_mode<synchronous>, transform_indices = @transform_1, window_bounds = array<i64: 4, 64>}, {pipeline_mode = #tpu.pipeline_mode<synchronous>, transform_indices = @transform_2, window_bounds = array<i64: 64, 4>}, {transform_indices = @transform_3, window_bounds = array<i64: 4, 64, 256>}]} {
    %c0 = arith.constant 0 : index
    %c0_0 = arith.constant 0 : index
    %c0_1 = arith.constant 0 : index
    %0 = vector.load %arg1[%c0, %c0_0, %c0_1] : memref<4x64x256xf32, #tpu.memory_space<vmem>>, vector<4x64x256xf32>
    %cst = arith.constant dense<0.000000e+00> : vector<4x64xf32>
    %1 = vector.multi_reduction <add>, %0, %cst [2] : vector<4x64x256xf32> to vector<4x64xf32>
    %cst_2 = arith.constant 3.906250e-03 : f32
    %2 = vector.broadcast %cst_2 : f32 to vector<4x64xf32>
    %3 = arith.mulf %1, %2 : vector<4x64xf32>
    %c0_3 = arith.constant 0 : index
    %c0_4 = arith.constant 0 : index
    %4 = vector.load %arg2[%c0_3, %c0_4] : memref<4x64xf32, #tpu.memory_space<vmem>>, vector<4x64xf32>
    %cst_5 = arith.constant dense<0.000000e+00> : vector<4x4xf32>
    %5 = tpu.matmul %3, %4, %cst_5 {dimension_numbers = #tpu.dot_dimension_numbers<[1], [1], [0], [0], [0, 0, 1, 0], [], []>} : vector<4x64xf32>, vector<4x64xf32>, vector<4x4xf32> -> vector<4x4xf32>
    %cst_6 = arith.constant 0.000000e+00 : f32
    %6 = vector.broadcast %cst_6 : f32 to vector<4x4xf32>
    %7 = arith.maximumf %5, %6 : vector<4x4xf32>
    %c0_7 = arith.constant 0 : index
    %c0_8 = arith.constant 0 : index
    %8 = vector.load %arg3[%c0_7, %c0_8] : memref<64x4xf32, #tpu.memory_space<vmem>>, vector<64x4xf32>
    %cst_9 = arith.constant dense<0.000000e+00> : vector<4x64xf32>
    %9 = tpu.matmul %7, %8, %cst_9 {dimension_numbers = #tpu.dot_dimension_numbers<[1], [1], [0], [0], [0, 0, 1, 0], [], []>} : vector<4x4xf32>, vector<64x4xf32>, vector<4x64xf32> -> vector<4x64xf32>
    %10 = arith.negf %9 : vector<4x64xf32>
    %11 = math.exp %10 : vector<4x64xf32>
    %cst_10 = arith.constant 1.000000e+00 : f32
    %12 = vector.broadcast %cst_10 : f32 to vector<4x64xf32>
    %13 = arith.addf %12, %11 : vector<4x64xf32>
    %14 = arith.divf %12, %13 : vector<4x64xf32>
    %c0_11 = arith.constant 0 : index
    %c0_12 = arith.constant 0 : index
    %c0_13 = arith.constant 0 : index
    %15 = vector.load %arg1[%c0_11, %c0_12, %c0_13] : memref<4x64x256xf32, #tpu.memory_space<vmem>>, vector<4x64x256xf32>
    %16 = vector.shape_cast %14 : vector<4x64xf32> to vector<4x64x1xf32>
    %17 = vector.broadcast %16 : vector<4x64x1xf32> to vector<4x64x256xf32>
    %18 = arith.mulf %15, %17 : vector<4x64x256xf32>
    %c0_14 = arith.constant 0 : index
    %c0_15 = arith.constant 0 : index
    %c0_16 = arith.constant 0 : index
    %19 = vector.load %arg4[%c0_14, %c0_15, %c0_16] : memref<4x64x256xf32, #tpu.memory_space<vmem>>, vector<4x64x256xf32>
    tpu.vector_store %arg4[%c0_14, %c0_15, %c0_16], %18 {strides = array<i32>} : memref<4x64x256xf32, #tpu.memory_space<vmem>>, vector<4x64x256xf32>,
    return
  }
  func.func @transform_0(%arg0: i32) -> (i32, i32, i32) {
    %c0_i32 = arith.constant 0 : i32
    %c0_i32_0 = arith.constant 0 : i32
    %c0_i32_1 = arith.constant 0 : i32
    return %arg0, %c0_i32, %c0_i32_0 : i32, i32, i32
  }
  func.func @transform_1(%arg0: i32) -> (i32, i32) {
    %c0_i32 = arith.constant 0 : i32
    %c0_i32_0 = arith.constant 0 : i32
    %c0_i32_1 = arith.constant 0 : i32
    return %c0_i32, %c0_i32_0 : i32, i32
  }
  func.func @transform_2(%arg0: i32) -> (i32, i32) {
    %c0_i32 = arith.constant 0 : i32
    %c0_i32_0 = arith.constant 0 : i32
    %c0_i32_1 = arith.constant 0 : i32
    return %c0_i32, %c0_i32_0 : i32, i32
  }
  func.func @transform_3(%arg0: i32) -> (i32, i32, i32) {
    %c0_i32 = arith.constant 0 : i32
    %c0_i32_0 = arith.constant 0 : i32
    %c0_i32_1 = arith.constant 0 : i32
    return %arg0, %c0_i32, %c0_i32_0 : i32, i32, i32
  }
}

</mosaic_0001>

<bundles_post_ra>
// kernel: tpu_custom_call.1
= control target key start
LH: loop header
LB: loop body
LE: loop exit
PB: predicated region body
PF: predicated region fallthrough
CT: control target
= control target key end

     0   :  { %8 = vsyncpa [#allocation3], 0  ;;  %s1449_s0 = inlined_call_operand.hbm [shape: f32[4,64,256], index: 0, kind: input, shape index: {}]   ;;  %s1450_s1 = inlined_call_operand.vmem [shape: f32[4,64], index: 1, kind: input, shape index: {}]   ;;  %s1451_s2 = inlined_call_operand.vmem [shape: f32[64,4], index: 2, kind: input, shape index: {}]   ;;  %s1452_s3 = inlined_call_operand.hbm [shape: f32[4,64,256], index: 3, kind: output, shape index: {}]  }
   0x1   :  { %9 = vsyncpa [#allocation4], 0  ;;  %s1007_s12 = smov [#allocation2]  }
   0x2   :  { %s15_s13 = sshll.u32 %s1007_s12, 4  ;;  %s16_s13 = int_to_ptr.vmem [resolvable:$true] %s15_s13 }
   0x3   :  { %s971_s14 = scalar_lea.vmem %s16_s13, 8192  ;;  %p976_p1 = scmp.lt.s32.totalorder %s16_s13, %s16_s13 }
   0x4   :  { %p972_p0 = scmp.ne.s32.totalorder %s16_s13, %s971_s14  ;;  %p977_p2 = scmp.lt.s32.totalorder %s971_s14, %s971_s14 }
   0x6   :  { %p978_p3 = por %p977_p2, %p976_p1 }
   0x8   :  { %p979_p4 = pnand %p978_p3, %p972_p0 }
   0xa   :  { %982 = shalt.err (!%p979_p4)
}
   0xb   :  { %s1008_s15 = smov 256   ;;  %s1009_s16 = smov 16  }
   0xc   :  { %21 = dma.hbm_to_vmem [thread:$0]  %s1449_s0, 8192, %s16_s13, [#allocation3], %s1008_s15, %s1008_s15, %s1009_s16  }
   0xd   :  { %1003 = dma.done.wait [#allocation3], 8192  }
   0xe   :  { %1004 = vsyncadd [#allocation3], 4294959104  ;;  %v1039_v0 = vld [vmem:[#allocation2 + $0x80] sm:$0xff]  ;;  %v1041_v1 = vld [vmem:[#allocation2 + $0x88] sm:$0xff]  ;;  %vm432_vm0 = vcmask 523264   ;;  %vm1011_vm1 = vmmov 0  }
   0xf   :  { %v1043_v2 = vld [vmem:[#allocation2] sm:$0xff]  ;;  %v117_v3 = vadd.f32 %v1041_v1, %v1039_v0  ;;  %v1047_v4 = vld [vmem:[#allocation2 + $0x8] sm:$0xff]  ;;  %v1049_v5 = vld [vmem:[#allocation2 + $0x90] sm:$0xff]  ;;  %vm517_vm2 = vcmask 31744   ;;  %vm265_vm3 = vcmask 130112   ;;  %vm272_vm4 = vcmask 195712  }
  0x10   :  { %1498 = vst [vmem:[#allocation8_spill] sm:$0xff] %v1049_v5  ;;  %v1051_v6 = vld [vmem:[#allocation2 + $0x98] sm:$0xff]  ;;  %v93_v7 = vadd.f32 %v1047_v4, %v1043_v2  ;;  %v1055_v8 = vld [vmem:[#allocation2 + $0x10] sm:$0xff]  ;;  %v1063_v12 = vld [vmem:[#allocation2 + $0xa0] sm:$0xff]  ;;  %vm279_vm5 = vcmask 261312   ;;  %vm286_vm6 = vcmask 326912  }
  0x11   :  { %1499 = vst [vmem:[#allocation9_spill] sm:$0xff] %v1051_v6  ;;  %v1057_v9 = vld [vmem:[#allocation2 + $0x18] sm:$0xff]  ;;  %118 = vadd.xlane.f32.xlu1 %v117_v3  ;;  %v120_v10 = vadd.f32 %v1051_v6, %v1049_v5  ;;  %v1065_v13 = vld [vmem:[#allocation2 + $0xa8] sm:$0xff]  ;;  %v1067_v14 = vld [vmem:[#allocation2 + $0x20] sm:$0xff]  ;;  %vm293_vm7 = vcmask 392512   ;;  %vm300_vm8 = vcmask 458112  }
  0x12   :  { %94 = vadd.xlane.f32.xlu0 %v93_v7  ;;  %v96_v11 = vadd.f32 %v1057_v9, %v1055_v8  ;;  %1500 = vst [vmem:[#allocation10_spill] sm:$0xff] %v1065_v13  ;;  %v1069_v15 = vld [vmem:[#allocation2 + $0x28] sm:$0xff]  ;;  %v123_v16 = vadd.f32 %v1065_v13, %v1063_v12  ;;  %v1075_v18 = vld [vmem:[#allocation2 + $0x110] sm:$0xff]  ;;  %v1077_v19 = vld [vmem:[#allocation2 + $0x118] sm:$0xff]  ;;  %vm307_vm9 = vcmask 523712   ;;  %vm426_vm10 = vcmask 1041409  }
  0x13   :  { %v99_v17 = vadd.f32 %v1069_v15, %v1067_v14  ;;  %1501 = vst [vmem:[#allocation11_spill] sm:$0xff] %v1075_v18  ;;  %1502 = vst [vmem:[#allocation12_spill] sm:$0xff] %v1077_v19  ;;  %v1079_v20 = vld [vmem:[#allocation2 + $0x100] sm:$0xff]  ;;  %v1081_v21 = vld [vmem:[#allocation2 + $0x108] sm:$0xff]  ;;  %v144_v22 = vadd.f32 %v1077_v19, %v1075_v18  ;;  %vm428_vm11 = vcmask 1042434   ;;  %vm430_vm12 = vcmask 1043459  }
  0x14   :  { %1503 = vst [vmem:[#allocation13_spill] sm:$0xff] %v1079_v20  ;;  %1504 = vst [vmem:[#allocation14_spill] sm:$0xff] %v1081_v21  ;;  %v141_v23 = vadd.f32 %v1081_v21, %v1079_v20  ;;  %v1087_v24 = vld [vmem:[#allocation2 + $0xb0] sm:$0xff]  ;;  %v1089_v25 = vld [vmem:[#allocation2 + $0xb8] sm:$0xff] }
  0x15   :  { %121 = vadd.xlane.f32.xlu1 %v120_v10  ;;  %1505 = vst [vmem:[#allocation15_spill] sm:$0xff] %v1087_v24  ;;  %1506 = vst [vmem:[#allocation16_spill] sm:$0xff] %v1089_v25  ;;  %v1091_v26 = vld [vmem:[#allocation2 + $0x30] sm:$0xff]  ;;  %v1093_v27 = vld [vmem:[#allocation2 + $0x38] sm:$0xff]  ;;  %v126_v28 = vadd.f32 %v1089_v25, %v1087_v24 }
  0x16   :  { %97 = vadd.xlane.f32.xlu0 %v96_v11  ;;  %v102_v29 = vadd.f32 %v1093_v27, %v1091_v26  ;;  %v1099_v30 = vld [vmem:[#allocation2 + $0x180] sm:$0xff]  ;;  %v1101_v31 = vld [vmem:[#allocation2 + $0x188] sm:$0xff]  ;;  %v1115_v38 = vld [vmem:[#allocation2 + $0x190] sm:$0xff] }
  0x17   :  { %1507 = vst [vmem:[#allocation17_spill] sm:$0xff] %v1099_v30  ;;  %1508 = vst [vmem:[#allocation18_spill] sm:$0xff] %v1101_v31  ;;  %v1103_v32 = vld [vmem:[#allocation2 + $0x120] sm:$0xff]  ;;  %v1105_v33 = vld [vmem:[#allocation2 + $0x128] sm:$0xff]  ;;  %v165_v34 = vadd.f32 %v1101_v31, %v1099_v30  ;;  %v254_v30 = vlaneseq }
  0x18   :  { %1509 = vst [vmem:[#allocation19_spill] sm:$0xff] %v1103_v32  ;;  %1510 = vst [vmem:[#allocation20_spill] sm:$0xff] %v1105_v33  ;;  %v147_v35 = vadd.f32 %v1105_v33, %v1103_v32  ;;  %v1111_v36 = vld [vmem:[#allocation2 + $0x40] sm:$0xff]  ;;  %v1113_v37 = vld [vmem:[#allocation2 + $0x48] sm:$0xff] }
  0x19   :  { %124 = vadd.xlane.f32.xlu1 %v123_v16  ;;  %1511 = vst [vmem:[#allocation21_spill] sm:$0xff] %v1115_v38  ;;  %v1117_v39 = vld [vmem:[#allocation2 + $0x198] sm:$0xff]  ;;  %v105_v40 = vadd.f32 %v1113_v37, %v1111_v36  ;;  %v1123_v42 = vld [vmem:[#allocation2 + $0x130] sm:$0xff]  ;;  %v1127_v44 = vld [vmem:[#allocation2 + $0xc0] sm:$0xff] }
  0x1a   :  { %100 = vadd.xlane.f32.xlu0 %v99_v17  ;;  %1512 = vst [vmem:[#allocation22_spill] sm:$0xff] %v1117_v39  ;;  %v168_v41 = vadd.f32 %v1117_v39, %v1115_v38  ;;  %1513 = vst [vmem:[#allocation23_spill] sm:$0xff] %v1123_v42  ;;  %v1125_v43 = vld [vmem:[#allocation2 + $0x138] sm:$0xff]  ;;  %v1129_v45 = vld [vmem:[#allocation2 + $0xc8] sm:$0xff] }
  0x1b   :  { %1514 = vst [vmem:[#allocation24_spill] sm:$0xff] %v1125_v43  ;;  %1515 = vst [vmem:[#allocation25_spill] sm:$0xff] %v1127_v44  ;;  %v150_v46 = vadd.f32 %v1125_v43, %v1123_v42  ;;  %v129_v47 = vadd.f32 %v1129_v45, %v1127_v44  ;;  %v1135_v48 = vld [vmem:[#allocation2 + $0x50] sm:$0xff]  ;;  %v1137_v49 = vld [vmem:[#allocation2 + $0x58] sm:$0xff] }
  0x1c   :  { %1516 = vst [vmem:[#allocation26_spill] sm:$0xff] %v1129_v45  ;;  %v1139_v50 = vld [vmem:[#allocation2 + $0x1a0] sm:$0xff]  ;;  %v1141_v51 = vld [vmem:[#allocation2 + $0x1a8] sm:$0xff]  ;;  %v108_v52 = vadd.f32 %v1137_v49, %v1135_v48  ;;  %v1151_v56 = vld [vmem:[#allocation2 + $0xd0] sm:$0xff] }
  0x1d   :  { %145 = vadd.xlane.f32.xlu1 %v144_v22  ;;  %1517 = vst [vmem:[#allocation27_spill] sm:$0xff] %v1139_v50  ;;  %1518 = vst [vmem:[#allocation28_spill] sm:$0xff] %v1141_v51  ;;  %v171_v53 = vadd.f32 %v1141_v51, %v1139_v50  ;;  %v1147_v54 = vld [vmem:[#allocation2 + $0x140] sm:$0xff]  ;;  %v1149_v55 = vld [vmem:[#allocation2 + $0x148] sm:$0xff] }
  0x1e   :  { %142 = vadd.xlane.f32.xlu0 %v141_v23  ;;  %1519 = vst [vmem:[#allocation29_spill] sm:$0xff] %v1147_v54  ;;  %1520 = vst [vmem:[#allocation30_spill] sm:$0xff] %v1149_v55  ;;  %v1153_v57 = vld [vmem:[#allocation2 + $0xd8] sm:$0xff]  ;;  %v153_v58 = vadd.f32 %v1149_v55, %v1147_v54  ;;  %v1159_v60 = vld [vmem:[#allocation2 + $0x60] sm:$0xff] }
  0x1f   :  { %1521 = vst [vmem:[#allocation31_spill] sm:$0xff] %v1151_v56  ;;  %1522 = vst [vmem:[#allocation32_spill] sm:$0xff] %v1153_v57  ;;  %v132_v59 = vadd.f32 %v1153_v57, %v1151_v56  ;;  %v1161_v61 = vld [vmem:[#allocation2 + $0x68] sm:$0xff]  ;;  %v1163_v62 = vld [vmem:[#allocation2 + $0x1b0] sm:$0xff] }
  0x20   :  { %1523 = vst [vmem:[#allocation33_spill] sm:$0xff] %v1163_v62  ;;  %v1165_v63 = vld [vmem:[#allocation2 + $0x1b8] sm:$0xff]  ;;  %v111_v3 = vadd.f32 %v1161_v61, %v1159_v60  ;;  %v1171_v10 = vld [vmem:[#allocation2 + $0x150] sm:$0xff]  ;;  %v1175_v16 = vld [vmem:[#allocation2 + $0xe0] sm:$0xff] }
  0x21   :  { %127 = vadd.xlane.f32.xlu1 %v126_v28  ;;  %1524 = vst [vmem:[#allocation34_spill] sm:$0xff] %v1165_v63  ;;  %v174_v7 = vadd.f32 %v1165_v63, %v1163_v62  ;;  %1525 = vst [vmem:[#allocation35_spill] sm:$0xff] %v1171_v10  ;;  %v1173_v11 = vld [vmem:[#allocation2 + $0x158] sm:$0xff]  ;;  %v1177_v17 = vld [vmem:[#allocation2 + $0xe8] sm:$0xff] }
  0x22   :  { %103 = vadd.xlane.f32.xlu0 %v102_v29  ;;  %1526 = vst [vmem:[#allocation36_spill] sm:$0xff] %v1173_v11  ;;  %1527 = vst [vmem:[#allocation37_spill] sm:$0xff] %v1175_v16  ;;  %v156_v22 = vadd.f32 %v1173_v11, %v1171_v10  ;;  %v135_v23 = vadd.f32 %v1177_v17, %v1175_v16  ;;  %v1183_v28 = vld [vmem:[#allocation2 + $0x70] sm:$0xff]  ;;  %v1185_v29 = vld [vmem:[#allocation2 + $0x78] sm:$0xff] }
  0x23   :  { %1528 = vst [vmem:[#allocation38_spill] sm:$0xff] %v1177_v17  ;;  %v1221_v62 = vld [vmem:[#allocation2 + $0x1f8] sm:$0xff] }
  0x24   :  { %1540 = vst [vmem:[#allocation50_spill] sm:$0xff] %v1221_v62 }
  0x25   :  { %166 = vadd.xlane.f32.xlu1 %v165_v34  ;;  %v1187_v34 = vld [vmem:[#allocation2 + $0x1c0] sm:$0xff] }
  0x26   :  { %148 = vadd.xlane.f32.xlu0 %v147_v35  ;;  %1529 = vst [vmem:[#allocation39_spill] sm:$0xff] %v1187_v34  ;;  %v1189_v35 = vld [vmem:[#allocation2 + $0x1c8] sm:$0xff] }
  0x27   :  { %1530 = vst [vmem:[#allocation40_spill] sm:$0xff] %v1189_v35 }
  0x29   :  { %106 = vadd.xlane.f32.xlu1 %v105_v40  ;;  %v114_v40 = vadd.f32 %v1185_v29, %v1183_v28 }
  0x2a   :  { %169 = vadd.xlane.f32.xlu0 %v168_v41  ;;  %v177_v41 = vadd.f32 %v1189_v35, %v1187_v34  ;;  %v1223_v35 = vld [vmem:[#allocation2 + $0x1e0] sm:$0xff]  ;;  %v1225_v34 = vld [vmem:[#allocation2 + $0x1e8] sm:$0xff] }
  0x2b   :  { %1541 = vst [vmem:[#allocation51_spill] sm:$0xff] %v1223_v35  ;;  %1542 = vst [vmem:[#allocation52_spill] sm:$0xff] %v1225_v34 }
  0x2d   :  { %151 = vadd.xlane.f32.xlu1 %v150_v46  ;;  %v1195_v46 = vld [vmem:[#allocation2 + $0x160] sm:$0xff] }
  0x2e   :  { %130 = vadd.xlane.f32.xlu0 %v129_v47  ;;  %1531 = vst [vmem:[#allocation41_spill] sm:$0xff] %v1195_v46  ;;  %v1197_v47 = vld [vmem:[#allocation2 + $0x168] sm:$0xff] }
  0x2f   :  { %1532 = vst [vmem:[#allocation42_spill] sm:$0xff] %v1197_v47 }
  0x31   :  { %109 = vadd.xlane.f32.xlu1 %v108_v52  ;;  %v1199_v52 = vld [vmem:[#allocation2 + $0xf0] sm:$0xff] }
  0x32   :  { %172 = vadd.xlane.f32.xlu0 %v171_v53  ;;  %1533 = vst [vmem:[#allocation43_spill] sm:$0xff] %v1199_v52  ;;  %v1201_v53 = vld [vmem:[#allocation2 + $0xf8] sm:$0xff] }
  0x33   :  { %1534 = vst [vmem:[#allocation44_spill] sm:$0xff] %v1201_v53 }
  0x35   :  { %154 = vadd.xlane.f32.xlu1 %v153_v58  ;;  %v159_v58 = vadd.f32 %v1197_v47, %v1195_v46  ;;  %v1267_v47 = vshrl.u32 %v254_v30, 7 }
  0x36   :  { %133 = vadd.xlane.f32.xlu0 %v132_v59  ;;  %v138_v59 = vadd.f32 %v1201_v53, %v1199_v52 }
  0x39   :  { %112 = vadd.xlane.f32.xlu1 %v111_v3  ;;  %v1207_v3 = vld [vmem:[#allocation2 + $0x170] sm:$0xff] }
  0x3a   :  { %175 = vadd.xlane.f32.xlu0 %v174_v7  ;;  %1535 = vst [vmem:[#allocation45_spill] sm:$0xff] %v1207_v3  ;;  %v1209_v7 = vld [vmem:[#allocation2 + $0x178] sm:$0xff] }
  0x3b   :  { %1536 = vst [vmem:[#allocation46_spill] sm:$0xff] %v1209_v7  ;;  %v162_v63 = vadd.f32 %v1209_v7, %v1207_v3 }
  0x3d   :  { %157 = vadd.xlane.f32.xlu1 %v156_v22  ;;  %v1211_v22 = vld [vmem:[#allocation2 + $0x1d0] sm:$0xff] }
  0x3e   :  { %136 = vadd.xlane.f32.xlu0 %v135_v23  ;;  %1537 = vst [vmem:[#allocation47_spill] sm:$0xff] %v1211_v22  ;;  %v1213_v23 = vld [vmem:[#allocation2 + $0x1d8] sm:$0xff] }
  0x3f   :  { %1538 = vst [vmem:[#allocation48_spill] sm:$0xff] %v1213_v23 }
  0x41   :  { %115 = vadd.xlane.f32.xlu1 %v114_v40  ;;  %v180_v40 = vadd.f32 %v1213_v23, %v1211_v22  ;;  %v221_v23 = vld [vmem:[%s1450_s1] sm:$0xf] }
  0x42   :  { %178 = vadd.xlane.f32.xlu0 %v177_v41  ;;  %v1219_v41 = vld [vmem:[#allocation2 + $0x1f0] sm:$0xff] }
  0x43   :  { %1539 = vst [vmem:[#allocation49_spill] sm:$0xff] %v1219_v41  ;;  %v186_v39 = vadd.f32 %v1221_v62, %v1219_v41 }
  0x45   :  { %160 = vadd.xlane.f32.xlu1 %v159_v58  ;;  %v183_v58 = vadd.f32 %v1225_v34, %v1223_v35 }
  0x46   :  { %139 = vadd.xlane.f32.xlu0 %v138_v59  ;;  %v1010_v59 = vmov 0.0  }
  0x47   :  { %929 = vmatprep.subr.mxu0 %v1010_v59  ;;  %934 = vmatprep.subr.mxu1 %v1010_v59 }
  0x48   :  { %930 = vmatpush3.xpose.msk.msra.mxu0 %vm432_vm0, %v221_v23  ;;  %931 = vmatprep.mubr.msk.f32.mxu0 %vm1011_vm1, %v1010_v59  ;;  %v514_v23 = vld [vmem:[%s1451_s2 + $0x28] sm:$0xff] }
  0x49   :  { %163 = vadd.xlane.f32.xlu1 %v162_v63  ;;  %950 = vmatprep.mubr.msk.f32.mxu1 %vm1011_vm1, %v1010_v59  ;;  %v516_v63 = vld [vmem:[%s1451_s2 + $0x38] sm:$0xff] }
  0x4a   :  { %181 = vadd.xlane.f32.xlu0 %v180_v40  ;;  %935 = vmatpush3.xpose.msk.msra.mxu1 %vm517_vm2, %v516_v63  ;;  %v513_v40 = vld [vmem:[%s1451_s2 + $0x20] sm:$0xff]  ;;  %v511_v63 = vld [vmem:[%s1451_s2 + $0x10] sm:$0xff] }
  0x4b   :  { %936 = vmatprep.subr.mxu1 %v1010_v59 }
  0x4d   :  { %187 = vadd.xlane.f32.xlu1 %v186_v39  ;;  %v515_v39 = vld [vmem:[%s1451_s2 + $0x30] sm:$0xff] }
  0x4e   :  { %184 = vadd.xlane.f32.xlu0 %v183_v58  ;;  %937 = vmatpush3.xpose.msk.msra.mxu1 %vm517_vm2, %v515_v39  ;;  %v512_v58 = vld [vmem:[%s1451_s2 + $0x18] sm:$0xff]  ;;  %v510_v39 = vld [vmem:[%s1451_s2 + $0x8] sm:$0xff] }
  0x4f   :  { %938 = vmatprep.subr.mxu1 %v1010_v59 }
  0x52   :  { %939 = vmatpush3.xpose.msk.msra.mxu1 %vm517_vm2, %v514_v23 }
  0x53   :  { %940 = vmatprep.subr.mxu1 %v1010_v59 }
  0x56   :  { %941 = vmatpush3.xpose.msk.msra.mxu1 %vm517_vm2, %v513_v40 }
  0x57   :  { %942 = vmatprep.subr.mxu1 %v1010_v59 }
  0x5a   :  { %943 = vmatpush3.xpose.msk.msra.mxu1 %vm517_vm2, %v512_v58 }
  0x5b   :  { %944 = vmatprep.subr.mxu1 %v1010_v59 }
  0x5e   :  { %945 = vmatpush3.xpose.msk.msra.mxu1 %vm517_vm2, %v511_v63 }
  0x5f   :  { %946 = vmatprep.subr.mxu1 %v1010_v59 }
  0x62   :  { %947 = vmatpush3.xpose.msk.msra.mxu1 %vm517_vm2, %v510_v39 }
  0x63   :  { %948 = vmatprep.subr.mxu1 %v1010_v59  ;;  %v255_v59 = vand.u32 127, %v254_v30 }
  0x65   :  { %v260_v46 = vadd.s32 4294967288, %v255_v59  ;;  %v267_v43 = vadd.s32 4294967280, %v255_v59  ;;  %v274_v55 = vadd.s32 4294967272, %v255_v59  ;;  %v281_v54 = vadd.s32 4294967264, %v255_v59 }
  0x66   :  { %v1274_v18 = vsub.s32 %v255_v59, %v1267_v47  ;;  %v288_v30 = vadd.s32 4294967256, %v255_v59  ;;  %v295_v53 = vadd.s32 4294967248, %v255_v59 }
  0x67   :  { %v1277_v33 = vsub.s32 %v260_v46, %v1267_v47  ;;  %v1280_v32 = vsub.s32 %v267_v43, %v1267_v47  ;;  %v1285_v20 = vsub.s32 %v274_v55, %v1267_v47  ;;  %v1288_v57 = vsub.s32 %v281_v54, %v1267_v47 }
  0x68   :  { %v1296_v55 = vsub.s32 %v295_v53, %v1267_v47 }
  0x9a   :  { %v119_v23 = vpop.xlane.xlu1 %118 }
  0x9b   :  { %v95_v40 = vpop.xlane.xlu0 %94  ;;  %v197_v46 = vmul.f32 0.00390625, %v119_v23 }
  0x9c   :  { %v189_v44 = vmul.f32 0.00390625, %v95_v40 }
  0x9e   :  { %v122_v62 = vpop.xlane.xlu1 %121 }
  0x9f   :  { %v98_v41 = vpop.xlane.xlu0 %97  ;;  %v198_v21 = vmul.f32 0.00390625, %v122_v62  ;;  %v1293_v62 = vsub.s32 %v288_v30, %v1267_v47 }
  0xa0   :  { %v190_v17 = vmul.f32 0.00390625, %v98_v41 }
  0xa1   :  { %v316_v5 = vrot.slane %v198_v21, %v1277_v33  ;;  %v259_v21 = vrot.slane %v189_v44, %v1274_v18 }
  0xa2   :  { %v125_v58 = vpop.xlane.xlu1 %124 }
  0xa3   :  { %v101_v22 = vpop.xlane.xlu0 %100  ;;  %v199_v16 = vmul.f32 0.00390625, %v125_v58  ;;  %v302_v58 = vadd.s32 4294967240, %v255_v59 }
  0xa4   :  { %v191_v43 = vmul.f32 0.00390625, %v101_v22  ;;  %v312_v22 = vrot.slane %v197_v46, %v1274_v18 }
  0xa6   :  { %v146_v34 = vpop.xlane.xlu1 %145 }
  0xa7   :  { %v143_v35 = vpop.xlane.xlu0 %142  ;;  %v206_v25 = vmul.f32 0.00390625, %v146_v34  ;;  %v264_v34 = vrot.slane %v190_v17, %v1277_v33  ;;  %v317_v17 = vsel %vm265_vm3, %v316_v5, %v312_v22 }
  0xa8   :  { %v205_v24 = vmul.f32 0.00390625, %v143_v35  ;;  %v271_v35 = vrot.slane %v191_v43, %v1280_v32 }
  0xa9   :  { %v355_v40 = vrot.slane %v206_v25, %v1277_v33 }
  0xaa   :  { %v128_v38 = vpop.xlane.xlu1 %127  ;;  %v351_v53 = vrot.slane %v205_v24, %v1274_v18  ;;  %v266_v24 = vsel %vm265_vm3, %v264_v34, %v259_v21 }
  0xab   :  { %v104_v51 = vpop.xlane.xlu0 %103  ;;  %v200_v45 = vmul.f32 0.00390625, %v128_v38  ;;  %v321_v38 = vrot.slane %v199_v16, %v1280_v32 }
  0xac   :  { %v192_v6 = vmul.f32 0.00390625, %v104_v51 }
  0xad   :  { %v326_v30 = vrot.slane %v200_v45, %v1285_v20  ;;  %v322_v45 = vsel %vm272_vm4, %v321_v38, %v317_v17 }
  0xae   :  { %v167_v50 = vpop.xlane.xlu1 %166 }
  0xaf   :  { %v149_v63 = vpop.xlane.xlu0 %148  ;;  %v327_v5 = vsel %vm279_vm5, %v326_v30, %v322_v45 }
  0xb0   :  { %v207_v13 = vmul.f32 0.00390625, %v149_v63  ;;  %v213_v63 = vmul.f32 0.00390625, %v167_v50  ;;  %v356_v50 = vsel %vm265_vm3, %v355_v40, %v351_v53 }
  0xb2   :  { %v107_v7 = vpop.xlane.xlu1 %106  ;;  %v360_v16 = vrot.slane %v207_v13, %v1280_v32 }
  0xb3   :  { %v170_v3 = vpop.xlane.xlu0 %169  ;;  %v193_v23 = vmul.f32 0.00390625, %v107_v7  ;;  %v278_v7 = vrot.slane %v192_v6, %v1285_v20  ;;  %v1315_v6 = vsub.s32 %v302_v58, %v1267_v47 }
  0xb4   :  { %v214_v51 = vmul.f32 0.00390625, %v170_v3  ;;  %v361_v58 = vsel %vm272_vm4, %v360_v16, %v356_v50 }
  0xb5   :  { %v285_v3 = vrot.slane %v193_v23, %v1288_v57  ;;  %v390_v23 = vrot.slane %v213_v63, %v1274_v18 }
  0xb6   :  { %v152_v31 = vpop.xlane.xlu1 %151  ;;  %v394_v44 = vrot.slane %v214_v51, %v1277_v33 }
  0xb7   :  { %v131_v11 = vpop.xlane.xlu0 %130  ;;  %v208_v59 = vmul.f32 0.00390625, %v152_v31  ;;  %v273_v31 = vsel %vm272_vm4, %v271_v35, %v266_v24 }
  0xb8   :  { %v201_v43 = vmul.f32 0.00390625, %v131_v11  ;;  %v280_v11 = vsel %vm279_vm5, %v278_v7, %v273_v31 }
  0xb9   :  { %v365_v22 = vrot.slane %v208_v59, %v1285_v20  ;;  %v287_v38 = vsel %vm286_vm6, %v285_v3, %v280_v11 }
  0xba   :  { %v1263_v10 = vpop.xlane.xlu1 %109  ;;  %v331_v51 = vrot.slane %v201_v43, %v1288_v57 }
  0xbb   :  { %v1265_v39 = vpop.xlane.xlu0 %172  ;;  %v194_v13 = vmul.f32 0.00390625, %v1263_v10  ;;  %v395_v10 = vsel %vm265_vm3, %v394_v44, %v390_v23  ;;  %v366_v59 = vsel %vm279_vm5, %v365_v22, %v361_v58 }
  0xbc   :  { %v215_v53 = vmul.f32 0.00390625, %v1265_v39  ;;  %v332_v39 = vsel %vm286_vm6, %v331_v51, %v327_v5 }
  0xbe   :  { %v1269_v42 = vpop.xlane.xlu1 %154 }
  0xbf   :  { %v1271_v19 = vpop.xlane.xlu0 %133  ;;  %v209_v34 = vmul.f32 0.00390625, %v1269_v42  ;;  %v292_v42 = vrot.slane %v194_v13, %v1293_v62 }
  0xc0   :  { %v202_v35 = vmul.f32 0.00390625, %v1271_v19 }
  0xc1   :  { %v370_v19 = vrot.slane %v209_v34, %v1288_v57  ;;  %v294_v50 = vsel %vm293_vm7, %v292_v42, %v287_v38 }
  0xc2   :  { %v1282_v52 = vpop.xlane.xlu1 %112 }
  0xc3   :  { %v1290_v56 = vpop.xlane.xlu0 %175  ;;  %v195_v17 = vmul.f32 0.00390625, %v1282_v52  ;;  %v371_v13 = vsel %vm286_vm6, %v370_v19, %v366_v59 }
  0xc4   :  { %v216_v21 = vmul.f32 0.00390625, %v1290_v56  ;;  %v399_v56 = vrot.slane %v215_v53, %v1280_v32 }
  0xc6   :  { %v158_v54 = vpop.xlane.xlu1 %157  ;;  %v404_v52 = vrot.slane %v216_v21, %v1285_v20  ;;  %v400_v38 = vsel %vm272_vm4, %v399_v56, %v395_v10 }
  0xc7   :  { %v137_v41 = vpop.xlane.xlu0 %136  ;;  %v210_v18 = vmul.f32 0.00390625, %v158_v54  ;;  %v336_v54 = vrot.slane %v202_v35, %v1293_v62 }
  0xc8   :  { %v203_v30 = vmul.f32 0.00390625, %v137_v41 }
  0xc9   :  { %v375_v45 = vrot.slane %v210_v18, %v1293_v62  ;;  %v337_v22 = vsel %vm293_vm7, %v336_v54, %v332_v39 }
  0xca   :  { %v116_v46 = vpop.xlane.xlu1 %115  ;;  %v341_v44 = vrot.slane %v203_v30, %v1296_v55 }
  0xcb   :  { %v179_v25 = vpop.xlane.xlu0 %178  ;;  %v196_v41 = vmul.f32 0.00390625, %v116_v46  ;;  %v299_v46 = vrot.slane %v195_v17, %v1296_v55  ;;  %v376_v51 = vsel %vm293_vm7, %v375_v45, %v371_v13 }
  0xcc   :  { %v217_v16 = vmul.f32 0.00390625, %v179_v25  ;;  %v342_v35 = vsel %vm300_vm8, %v341_v44, %v337_v22  ;;  %v623_v44 = vsub.s32 0, %v1267_v47 }
  0xcd   :  { %v306_v34 = vrot.slane %v196_v41, %v1315_v6  ;;  %v301_v42 = vsel %vm300_vm8, %v299_v46, %v294_v50  ;;  %v728_v46 = vsub.s32 3, %v1267_v47 }
  0xce   :  { %v161_v33 = vpop.xlane.xlu1 %160  ;;  %v409_v11 = vrot.slane %v217_v16, %v1288_v57  ;;  %v405_v57 = vsel %vm279_vm5, %v404_v52, %v400_v38  ;;  %v658_v52 = vsub.s32 1, %v1267_v47 }
  0xcf   :  { %v140_v40 = vpop.xlane.xlu0 %139  ;;  %v211_v7 = vmul.f32 0.00390625, %v161_v33 }
  0xd0   :  { %v204_v63 = vmul.f32 0.00390625, %v140_v40 }
  0xd1   :  { %v380_v25 = vrot.slane %v211_v7, %v1296_v55  ;;  %v308_v7 = vsel %vm307_vm9, %v306_v34, %v301_v42 }
  0xd2   :  { %v164_v3 = vpop.xlane.xlu1 %163  ;;  %v346_v5 = vrot.slane %v204_v63, %v1315_v6 }
  0xd3   :  { %v212_v43 = vmul.f32 0.00390625, %v164_v3  ;;  %v182_v24 = vpop.xlane.xlu0 %181  ;;  %v381_v53 = vsel %vm300_vm8, %v380_v25, %v376_v51 }
  0xd4   :  { %v218_v31 = vmul.f32 0.00390625, %v182_v24  ;;  %v347_v18 = vsel %vm307_vm9, %v346_v5, %v342_v35  ;;  %v693_v5 = vsub.s32 2, %v1267_v47 }
  0xd5   :  { %v385_v32 = vrot.slane %v212_v43, %v1315_v6  ;;  %v427_v19 = vsel %vm426_vm10, %v347_v18, %v308_v7 }
  0xd6   :  { %v188_v23 = vpop.xlane.xlu1 %187  ;;  %v414_v33 = vrot.slane %v218_v31, %v1293_v62  ;;  %v410_v62 = vsel %vm286_vm6, %v409_v11, %v405_v57 }
  0xd7   :  { %v185_v20 = vpop.xlane.xlu0 %184  ;;  %v220_v58 = vmul.f32 0.00390625, %v188_v23  ;;  %v386_v21 = vsel %vm307_vm9, %v385_v32, %v381_v53 }
  0xd8   :  { %v219_v40 = vmul.f32 0.00390625, %v185_v20  ;;  %v415_v63 = vsel %vm293_vm7, %v414_v33, %v410_v62  ;;  %v1543_v62 = vld [vmem:[#allocation10_spill] sm:$0xff] }
  0xd9   :  { %v424_v30 = vrot.slane %v220_v58, %v1315_v6  ;;  %v429_v6 = vsel %vm428_vm11, %v386_v21, %v427_v19  ;;  %v1547_v19 = vld [vmem:[#allocation26_spill] sm:$0xff] }
  0xda   :  { %v419_v10 = vrot.slane %v219_v40, %v1296_v55  ;;  %v509_v55 = vld [vmem:[%s1451_s2] sm:$0xff]  ;;  %s1012_s2 = smov [#allocation5]  }
  0xdb   :  { %949 = vmatpush3.xpose.msk.msra.mxu1 %vm517_vm2, %v509_v55  ;;  %s894_s8 = sshll.u32 %s1012_s2, 4  ;;  %s895_s8 = int_to_ptr.vmem [resolvable:$true] %s894_s8 }
  0xdc   :  { %v420_v59 = vsel %vm300_vm8, %v419_v10, %v415_v63  ;;  %v1545_v10 = vld [vmem:[#allocation9_spill] sm:$0xff]  ;;  %s983_s9 = scalar_lea.vmem %s895_s8, 8192  ;;  %p988_p6 = scmp.lt.s32.totalorder %s895_s8, %s895_s8 }
  0xdd   :  { %v425_v17 = vsel %vm307_vm9, %v424_v30, %v420_v59  ;;  %v1546_v63 = vld [vmem:[#allocation25_spill] sm:$0xff]  ;;  %p984_p5 = scmp.ne.s32.totalorder %s895_s8, %s983_s9  ;;  %p989_p7 = scmp.lt.s32.totalorder %s983_s9, %s983_s9 }
  0xde   :  { %v431_v16 = vsel %vm430_vm12, %v425_v17, %v429_v6  ;;  %v1548_v17 = vld [vmem:[#allocation15_spill] sm:$0xff] }
  0xdf   :  { %932 = vmatmul.mubr.msk.f32.vlgmr.msra.gmra.mxu0 %vm432_vm0, %v431_v16  ;;  %v1549_v16 = vld [vmem:[#allocation16_spill] sm:$0xff]  ;;  %p990_p8 = por %p989_p7, %p988_p6 }
  0xe1   :  { %p991_p9 = pnand %p990_p8, %p984_p5 }
 0x19f   :  { %v504_v3 = vpop.f32.mrf.mxu0 }
 0x1a0   :  { %v508_v39 = vmax.f32 %v504_v3, 0.0  ;;  %v1550_v3 = vld [vmem:[#allocation37_spill] sm:$0xff] }
 0x1a1   :  { %v933_v54 = vpop.f32.mrf.mxu0 }
 0x1a2   :  { %951 = vmatmul.mubr.msk.f32.vlgmr.msra.gmra.mxu1 %vm517_vm2, %v508_v39  ;;  %v1551_v54 = vld [vmem:[#allocation38_spill] sm:$0xff] }
 0x262   :  { %v611_v41 = vpop.f32.mrf.mxu1 }
 0x263   :  { %v917_v43 = vmul.f32 -1.442695, %v611_v41 }
 0x264   :  { %v952_v24 = vpop.f32.mrf.mxu1 }
 0x265   :  { %959 = vpow2.f32 %v917_v43 }
 0x272   :  { %v960_v56 = vpop.eup %959 }
 0x273   :  { %v618_v45 = vadd.f32 1.0, %v960_v56  ;;  %v1552_v56 = vld [vmem:[#allocation31_spill] sm:$0xff] }
 0x275   :  { %961 = vrcp.f32 %v618_v45 }
 0x282   :  { %v962_v31 = vpop.eup %961 }
 0x283   :  { %v624_v50 = vrot.slane %v962_v31, %v623_v44  ;;  %v659_v25 = vrot.slane %v962_v31, %v658_v52  ;;  %v694_v13 = vrot.slane %v962_v31, %v693_v5  ;;  %v729_v11 = vrot.slane %v962_v31, %v728_v46  ;;  %v1553_v44 = vld [vmem:[#allocation32_spill] sm:$0xff] }
 0x285   :  { %630 = vbcast.lane.b32.xlu1 %v624_v50, 264  ;;  %626 = vbcast.lane.b32.xlu0 %v624_v50, 256 }
 0x289   :  { %634 = vbcast.lane.b32.xlu1 %v624_v50, 272  ;;  %642 = vbcast.lane.b32.xlu0 %v624_v50, 288 }
 0x28d   :  { %638 = vbcast.lane.b32.xlu1 %v624_v50, 280  ;;  %650 = vbcast.lane.b32.xlu0 %v624_v50, 304 }
 0x291   :  { %646 = vbcast.lane.b32.xlu1 %v624_v50, 296  ;;  %661 = vbcast.lane.b32.xlu0 %v659_v25, 256 }
 0x295   :  { %654 = vbcast.lane.b32.xlu1 %v624_v50, 312  ;;  %669 = vbcast.lane.b32.xlu0 %v659_v25, 272  ;;  %v1554_v50 = vld [vmem:[#allocation13_spill] sm:$0xff] }
 0x299   :  { %665 = vbcast.lane.b32.xlu1 %v659_v25, 264  ;;  %677 = vbcast.lane.b32.xlu0 %v659_v25, 288 }
 0x29d   :  { %673 = vbcast.lane.b32.xlu1 %v659_v25, 280  ;;  %685 = vbcast.lane.b32.xlu0 %v659_v25, 304 }
 0x2a1   :  { %681 = vbcast.lane.b32.xlu1 %v659_v25, 296  ;;  %696 = vbcast.lane.b32.xlu0 %v694_v13, 256 }
 0x2a5   :  { %689 = vbcast.lane.b32.xlu1 %v659_v25, 312  ;;  %704 = vbcast.lane.b32.xlu0 %v694_v13, 272  ;;  %v1555_v25 = vld [vmem:[#allocation14_spill] sm:$0xff] }
 0x2a9   :  { %700 = vbcast.lane.b32.xlu1 %v694_v13, 264  ;;  %712 = vbcast.lane.b32.xlu0 %v694_v13, 288 }
 0x2ad   :  { %708 = vbcast.lane.b32.xlu1 %v694_v13, 280  ;;  %720 = vbcast.lane.b32.xlu0 %v694_v13, 304 }
 0x2b1   :  { %716 = vbcast.lane.b32.xlu1 %v694_v13, 296  ;;  %731 = vbcast.lane.b32.xlu0 %v729_v11, 256 }
 0x2b5   :  { %724 = vbcast.lane.b32.xlu1 %v694_v13, 312  ;;  %739 = vbcast.lane.b32.xlu0 %v729_v11, 272 }
 0x2b9   :  { %735 = vbcast.lane.b32.xlu1 %v729_v11, 264  ;;  %747 = vbcast.lane.b32.xlu0 %v729_v11, 288 }
 0x2bd   :  { %743 = vbcast.lane.b32.xlu1 %v729_v11, 280  ;;  %755 = vbcast.lane.b32.xlu0 %v729_v11, 304 }
 0x2c1   :  { %751 = vbcast.lane.b32.xlu1 %v729_v11, 296 }
 0x2c5   :  { %759 = vbcast.lane.b32.xlu1 %v729_v11, 312  ;;  %v1556_v11 = vld [vmem:[#allocation43_spill] sm:$0xff] }
 0x2f7   :  { %v631_v32 = vpop.permute.xlu1 %630  ;;  %v627_v23 = vpop.permute.xlu0 %626 }
 0x2f8   :  { %v763_v22 = vmul.f32 %v631_v32, %v1055_v8  ;;  %v764_v34 = vmul.f32 %v631_v32, %v1057_v9  ;;  %v761_v47 = vmul.f32 %v627_v23, %v1043_v2  ;;  %v762_v33 = vmul.f32 %v627_v23, %v1047_v4  ;;  %v1557_v23 = vld [vmem:[#allocation44_spill] sm:$0xff] }
 0x2fa   :  { %827 = vst [vmem:[#allocation5 + $0x10] sm:$0xff] %v763_v22  ;;  %828 = vst [vmem:[#allocation5 + $0x18] sm:$0xff] %v764_v34  ;;  %v1558_v34 = vld [vmem:[#allocation19_spill] sm:$0xff] }
 0x2fb   :  { %825 = vst [vmem:[#allocation5] sm:$0xff] %v761_v47  ;;  %826 = vst [vmem:[#allocation5 + $0x8] sm:$0xff] %v762_v33  ;;  %v635_v20 = vpop.permute.xlu1 %634  ;;  %v643_v58 = vpop.permute.xlu0 %642  ;;  %v1559_v33 = vld [vmem:[#allocation20_spill] sm:$0xff] }
 0x2fc   :  { %v765_v38 = vmul.f32 %v635_v20, %v1067_v14  ;;  %v766_v51 = vmul.f32 %v635_v20, %v1069_v15  ;;  %v769_v35 = vmul.f32 %v643_v58, %v1111_v36  ;;  %v770_v8 = vmul.f32 %v643_v58, %v1113_v37 }
 0x2fe   :  { %829 = vst [vmem:[#allocation5 + $0x20] sm:$0xff] %v765_v38  ;;  %830 = vst [vmem:[#allocation5 + $0x28] sm:$0xff] %v766_v51  ;;  %v1560_v51 = vld [vmem:[#allocation11_spill] sm:$0xff] }
 0x2ff   :  { %833 = vst [vmem:[#allocation5 + $0x40] sm:$0xff] %v769_v35  ;;  %834 = vst [vmem:[#allocation5 + $0x48] sm:$0xff] %v770_v8  ;;  %v639_v2 = vpop.permute.xlu1 %638  ;;  %v651_v4 = vpop.permute.xlu0 %650  ;;  %v1561_v8 = vld [vmem:[#allocation12_spill] sm:$0xff] }
 0x300   :  { %v767_v9 = vmul.f32 %v639_v2, %v1091_v26  ;;  %v768_v40 = vmul.f32 %v639_v2, %v1093_v27  ;;  %v773_v57 = vmul.f32 %v651_v4, %v1159_v60  ;;  %v774_v14 = vmul.f32 %v651_v4, %v1161_v61  ;;  %v1562_v4 = vld [vmem:[#allocation29_spill] sm:$0xff] }
 0x302   :  { %831 = vst [vmem:[#allocation5 + $0x30] sm:$0xff] %v767_v9  ;;  %832 = vst [vmem:[#allocation5 + $0x38] sm:$0xff] %v768_v40  ;;  %v1563_v40 = vld [vmem:[#allocation30_spill] sm:$0xff] }
 0x303   :  { %837 = vst [vmem:[#allocation5 + $0x60] sm:$0xff] %v773_v57  ;;  %838 = vst [vmem:[#allocation5 + $0x68] sm:$0xff] %v774_v14  ;;  %v647_v15 = vpop.permute.xlu1 %646  ;;  %v662_v36 = vpop.permute.xlu0 %661 }
 0x304   :  { %v771_v37 = vmul.f32 %v647_v15, %v1135_v48  ;;  %v772_v53 = vmul.f32 %v647_v15, %v1137_v49  ;;  %v777_v18 = vmul.f32 %v662_v36, %v1039_v0  ;;  %v778_v26 = vmul.f32 %v662_v36, %v1041_v1  ;;  %v1544_v49 = vld [vmem:[#allocation8_spill] sm:$0xff]  ;;  %v1564_v36 = vld [vmem:[#allocation23_spill] sm:$0xff] }
 0x306   :  { %835 = vst [vmem:[#allocation5 + $0x50] sm:$0xff] %v771_v37  ;;  %836 = vst [vmem:[#allocation5 + $0x58] sm:$0xff] %v772_v53  ;;  %v1565_v53 = vld [vmem:[#allocation24_spill] sm:$0xff] }
 0x307   :  { %841 = vst [vmem:[#allocation5 + $0x80] sm:$0xff] %v777_v18  ;;  %842 = vst [vmem:[#allocation5 + $0x88] sm:$0xff] %v778_v26  ;;  %v655_v27 = vpop.permute.xlu1 %654  ;;  %v670_v60 = vpop.permute.xlu0 %669  ;;  %v1566_v26 = vld [vmem:[#allocation41_spill] sm:$0xff] }
 0x308   :  { %v775_v61 = vmul.f32 %v655_v27, %v1183_v28  ;;  %v776_v30 = vmul.f32 %v655_v27, %v1185_v29  ;;  %v781_v42 = vmul.f32 %v670_v60, %v1063_v12  ;;  %v782_v48 = vmul.f32 %v670_v60, %v1543_v62  ;;  %v1567_v60 = vld [vmem:[#allocation42_spill] sm:$0xff]  ;;  %v1568_v62 = vld [vmem:[#allocation35_spill] sm:$0xff] }
 0x30a   :  { %839 = vst [vmem:[#allocation5 + $0x70] sm:$0xff] %v775_v61  ;;  %840 = vst [vmem:[#allocation5 + $0x78] sm:$0xff] %v776_v30 }
 0x30b   :  { %845 = vst [vmem:[#allocation5 + $0xa0] sm:$0xff] %v781_v42  ;;  %846 = vst [vmem:[#allocation5 + $0xa8] sm:$0xff] %v782_v48  ;;  %v666_v0 = vpop.permute.xlu1 %665  ;;  %v678_v1 = vpop.permute.xlu0 %677 }
 0x30c   :  { %v779_v21 = vmul.f32 %v666_v0, %v1544_v49  ;;  %v780_v7 = vmul.f32 %v666_v0, %v1545_v10  ;;  %v785_v59 = vmul.f32 %v678_v1, %v1546_v63  ;;  %v786_v28 = vmul.f32 %v678_v1, %v1547_v19  ;;  %v1569_v0 = vld [vmem:[#allocation36_spill] sm:$0xff]  ;;  %v1570_v49 = vld [vmem:[#allocation17_spill] sm:$0xff]  ;;  %v1571_v10 = vld [vmem:[#allocation18_spill] sm:$0xff] }
 0x30d   :  { %v1572_v19 = vld [vmem:[#allocation45_spill] sm:$0xff] }
 0x30e   :  { %843 = vst [vmem:[#allocation5 + $0x90] sm:$0xff] %v779_v21  ;;  %844 = vst [vmem:[#allocation5 + $0x98] sm:$0xff] %v780_v7 }
 0x30f   :  { %849 = vst [vmem:[#allocation5 + $0xc0] sm:$0xff] %v785_v59  ;;  %850 = vst [vmem:[#allocation5 + $0xc8] sm:$0xff] %v786_v28  ;;  %v674_v12 = vpop.permute.xlu1 %673  ;;  %v686_v29 = vpop.permute.xlu0 %685 }
 0x310   :  { %v783_v6 = vmul.f32 %v674_v12, %v1548_v17  ;;  %v784_v55 = vmul.f32 %v674_v12, %v1549_v16  ;;  %v789_v39 = vmul.f32 %v686_v29, %v1550_v3  ;;  %v790_v41 = vmul.f32 %v686_v29, %v1551_v54  ;;  %v1573_v12 = vld [vmem:[#allocation46_spill] sm:$0xff]  ;;  %v1574_v17 = vld [vmem:[#allocation27_spill] sm:$0xff]  ;;  %v1575_v16 = vld [vmem:[#allocation28_spill] sm:$0xff] }
 0x311   :  { %v1576_v54 = vld [vmem:[#allocation21_spill] sm:$0xff] }
 0x312   :  { %847 = vst [vmem:[#allocation5 + $0xb0] sm:$0xff] %v783_v6  ;;  %848 = vst [vmem:[#allocation5 + $0xb8] sm:$0xff] %v784_v55 }
 0x313   :  { %853 = vst [vmem:[#allocation5 + $0xe0] sm:$0xff] %v789_v39  ;;  %854 = vst [vmem:[#allocation5 + $0xe8] sm:$0xff] %v790_v41  ;;  %v682_v43 = vpop.permute.xlu1 %681  ;;  %v697_v24 = vpop.permute.xlu0 %696 }
 0x314   :  { %v787_v45 = vmul.f32 %v682_v43, %v1552_v56  ;;  %v788_v31 = vmul.f32 %v682_v43, %v1553_v44  ;;  %v793_v52 = vmul.f32 %v697_v24, %v1554_v50  ;;  %v794_v5 = vmul.f32 %v697_v24, %v1555_v25  ;;  %v1577_v43 = vld [vmem:[#allocation22_spill] sm:$0xff]  ;;  %v1578_v56 = vld [vmem:[#allocation39_spill] sm:$0xff]  ;;  %v1579_v44 = vld [vmem:[#allocation40_spill] sm:$0xff] }
 0x315   :  { %v1580_v25 = vld [vmem:[#allocation33_spill] sm:$0xff] }
 0x316   :  { %851 = vst [vmem:[#allocation5 + $0xd0] sm:$0xff] %v787_v45  ;;  %852 = vst [vmem:[#allocation5 + $0xd8] sm:$0xff] %v788_v31 }
 0x317   :  { %857 = vst [vmem:[#allocation5 + $0x100] sm:$0xff] %v793_v52  ;;  %858 = vst [vmem:[#allocation5 + $0x108] sm:$0xff] %v794_v5  ;;  %v690_v13 = vpop.permute.xlu1 %689  ;;  %v705_v46 = vpop.permute.xlu0 %704 }
 0x318   :  { %v791_v32 = vmul.f32 %v690_v13, %v1556_v11  ;;  %v792_v22 = vmul.f32 %v690_v13, %v1557_v23  ;;  %v797_v47 = vmul.f32 %v705_v46, %v1558_v34  ;;  %v798_v20 = vmul.f32 %v705_v46, %v1559_v33  ;;  %v1581_v13 = vld [vmem:[#allocation34_spill] sm:$0xff]  ;;  %v1582_v11 = vld [vmem:[#allocation51_spill] sm:$0xff]  ;;  %v1583_v23 = vld [vmem:[#allocation52_spill] sm:$0xff] }
 0x31a   :  { %855 = vst [vmem:[#allocation5 + $0xf0] sm:$0xff] %v791_v32  ;;  %856 = vst [vmem:[#allocation5 + $0xf8] sm:$0xff] %v792_v22 }
 0x31b   :  { %861 = vst [vmem:[#allocation5 + $0x120] sm:$0xff] %v797_v47  ;;  %862 = vst [vmem:[#allocation5 + $0x128] sm:$0xff] %v798_v20  ;;  %v701_v58 = vpop.permute.xlu1 %700  ;;  %v713_v38 = vpop.permute.xlu0 %712  ;;  %v1584_v47 = vld [vmem:[#allocation47_spill] sm:$0xff]  ;;  %v1585_v20 = vld [vmem:[#allocation48_spill] sm:$0xff] }
 0x31c   :  { %v795_v35 = vmul.f32 %v701_v58, %v1560_v51  ;;  %v796_v2 = vmul.f32 %v701_v58, %v1561_v8  ;;  %v801_v9 = vmul.f32 %v713_v38, %v1562_v4  ;;  %v802_v57 = vmul.f32 %v713_v38, %v1563_v40  ;;  %v1586_v51 = vld [vmem:[#allocation49_spill] sm:$0xff]  ;;  %v1587_v8 = vld [vmem:[#allocation50_spill] sm:$0xff] }
 0x31e   :  { %859 = vst [vmem:[#allocation5 + $0x110] sm:$0xff] %v795_v35  ;;  %860 = vst [vmem:[#allocation5 + $0x118] sm:$0xff] %v796_v2 }
 0x31f   :  { %865 = vst [vmem:[#allocation5 + $0x140] sm:$0xff] %v801_v9  ;;  %866 = vst [vmem:[#allocation5 + $0x148] sm:$0xff] %v802_v57  ;;  %v709_v14 = vpop.permute.xlu1 %708  ;;  %v721_v15 = vpop.permute.xlu0 %720 }
 0x320   :  { %v799_v37 = vmul.f32 %v709_v14, %v1564_v36  ;;  %v800_v18 = vmul.f32 %v709_v14, %v1565_v53  ;;  %v805_v27 = vmul.f32 %v721_v15, %v1566_v26  ;;  %v806_v61 = vmul.f32 %v721_v15, %v1567_v60 }
 0x322   :  { %863 = vst [vmem:[#allocation5 + $0x130] sm:$0xff] %v799_v37  ;;  %864 = vst [vmem:[#allocation5 + $0x138] sm:$0xff] %v800_v18 }
 0x323   :  { %869 = vst [vmem:[#allocation5 + $0x160] sm:$0xff] %v805_v27  ;;  %870 = vst [vmem:[#allocation5 + $0x168] sm:$0xff] %v806_v61  ;;  %v717_v30 = vpop.permute.xlu1 %716  ;;  %v732_v42 = vpop.permute.xlu0 %731 }
 0x324   :  { %v803_v48 = vmul.f32 %v717_v30, %v1568_v62  ;;  %v804_v1 = vmul.f32 %v717_v30, %v1569_v0  ;;  %v809_v21 = vmul.f32 %v732_v42, %v1570_v49  ;;  %v810_v7 = vmul.f32 %v732_v42, %v1571_v10 }
 0x326   :  { %867 = vst [vmem:[#allocation5 + $0x150] sm:$0xff] %v803_v48  ;;  %868 = vst [vmem:[#allocation5 + $0x158] sm:$0xff] %v804_v1 }
 0x327   :  { %873 = vst [vmem:[#allocation5 + $0x180] sm:$0xff] %v809_v21  ;;  %874 = vst [vmem:[#allocation5 + $0x188] sm:$0xff] %v810_v7  ;;  %v725_v63 = vpop.permute.xlu1 %724  ;;  %v740_v59 = vpop.permute.xlu0 %739 }
 0x328   :  { %v807_v28 = vmul.f32 %v725_v63, %v1572_v19  ;;  %v808_v29 = vmul.f32 %v725_v63, %v1573_v12  ;;  %v813_v6 = vmul.f32 %v740_v59, %v1574_v17  ;;  %v814_v55 = vmul.f32 %v740_v59, %v1575_v16 }
 0x32a   :  { %871 = vst [vmem:[#allocation5 + $0x170] sm:$0xff] %v807_v28  ;;  %872 = vst [vmem:[#allocation5 + $0x178] sm:$0xff] %v808_v29 }
 0x32b   :  { %877 = vst [vmem:[#allocation5 + $0x1a0] sm:$0xff] %v813_v6  ;;  %878 = vst [vmem:[#allocation5 + $0x1a8] sm:$0xff] %v814_v55  ;;  %v736_v3 = vpop.permute.xlu1 %735  ;;  %v748_v39 = vpop.permute.xlu0 %747 }
 0x32c   :  { %v811_v41 = vmul.f32 %v736_v3, %v1576_v54  ;;  %v812_v24 = vmul.f32 %v736_v3, %v1577_v43  ;;  %v817_v45 = vmul.f32 %v748_v39, %v1578_v56  ;;  %v818_v31 = vmul.f32 %v748_v39, %v1579_v44 }
 0x32e   :  { %875 = vst [vmem:[#allocation5 + $0x190] sm:$0xff] %v811_v41  ;;  %876 = vst [vmem:[#allocation5 + $0x198] sm:$0xff] %v812_v24 }
 0x32f   :  { %881 = vst [vmem:[#allocation5 + $0x1c0] sm:$0xff] %v817_v45  ;;  %882 = vst [vmem:[#allocation5 + $0x1c8] sm:$0xff] %v818_v31  ;;  %v744_v50 = vpop.permute.xlu1 %743  ;;  %v756_v52 = vpop.permute.xlu0 %755 }
 0x330   :  { %v815_v5 = vmul.f32 %v744_v50, %v1580_v25  ;;  %v816_v46 = vmul.f32 %v744_v50, %v1581_v13  ;;  %v821_v32 = vmul.f32 %v756_v52, %v1582_v11  ;;  %v822_v22 = vmul.f32 %v756_v52, %v1583_v23 }
 0x332   :  { %879 = vst [vmem:[#allocation5 + $0x1b0] sm:$0xff] %v815_v5  ;;  %880 = vst [vmem:[#allocation5 + $0x1b8] sm:$0xff] %v816_v46 }
 0x333   :  { %885 = vst [vmem:[#allocation5 + $0x1e0] sm:$0xff] %v821_v32  ;;  %886 = vst [vmem:[#allocation5 + $0x1e8] sm:$0xff] %v822_v22  ;;  %v752_v34 = vpop.permute.xlu1 %751 }
 0x334   :  { %v819_v33 = vmul.f32 %v752_v34, %v1584_v47  ;;  %v820_v58 = vmul.f32 %v752_v34, %v1585_v20 }
 0x336   :  { %883 = vst [vmem:[#allocation5 + $0x1d0] sm:$0xff] %v819_v33  ;;  %884 = vst [vmem:[#allocation5 + $0x1d8] sm:$0xff] %v820_v58 }
 0x337   :  { %v760_v38 = vpop.permute.xlu1 %759 }
 0x338   :  { %v823_v35 = vmul.f32 %v760_v38, %v1586_v51  ;;  %v824_v2 = vmul.f32 %v760_v38, %v1587_v8 }
 0x33a   :  { %887 = vst [vmem:[#allocation5 + $0x1f0] sm:$0xff] %v823_v35  ;;  %888 = vst [vmem:[#allocation5 + $0x1f8] sm:$0xff] %v824_v2 }
 0x33b   :  { %994 = shalt.err (!%p991_p9)
}
 0x33c   :  { %900 = dma.vmem_to_hbm [thread:$0]  %s895_s8, 8192, %s1452_s3, [#allocation4], %s1008_s15, %s1008_s15, %s1009_s16  }
 0x33d   :  { %1005 = dma.done.wait [#allocation4], 8192  }
 0x33e   :  { %1006 = vsyncadd [#allocation4], 4294959104 }
 0x33f   :  { %904 = vsyncpa [#allocation3], 1 }
 0x340   :  { %905 = vsyncpa [#allocation4], 1 }

</bundles_post_ra>
